<compile_context>
chip_gen: v6e
topology: v6e:2x2x1
jax: 0.10.0
libtpu: 0.0.40
codegen_flags: <defaults>
</compile_context>

<pallas_src>
import functools

import jax
import jax.numpy as jnp
from jax import lax
from jax.experimental import pallas as pl
from jax.experimental.pallas import tpu as pltpu

LANES = 128
ACC_SUBLANES = 8            # accumulators are f32 -> natural (8,128) vreg tile
MAX_BLOCK_ROWS = 2048       # 2048x128 f32 = 1 MiB/block; multiple of 8/16/32 (f32/bf16/i8 packing)


def _vmem_budget_bytes():
    """Usable VMEM budget for caching the whole tensor (generation-aware)."""
    try:
        cap = int(pltpu.get_tpu_info().vmem_capacity_bytes)
    except Exception:
        cap = 64 << 20           # conservative (v7x physical VMEM per TC)
    return int(cap * 0.75)


def _fused_hoyer_spike_kernel(params_ref, x_ref, o_ref, hoyer_ref,
                              acc_sq, acc_abs, thr_sm, cache,
                              *, x_thr_scale, if_spike, use_cache,
                              nblk, blk_rows, rows):
    p = pl.program_id(0)            # 0 = reduce pass, 1 = spike pass
    i = pl.program_id(1)

    scale = params_ref[0]           # 1 / |threshold|
    abs_thr = params_ref[1]         # |threshold|

    multi_block = nblk > 1
    tail_mask_needed = multi_block and (nblk * blk_rows != rows)

    def write_thresholds(ssq, sabs):
        # hoyer on the scaled domain, computed from un-scaled sums:
        #   sum((x/|t|)^2) / sum(x/|t|) == (1/|t|) * sum(x^2) / sum(x)
        hoyer = scale * ssq / sabs                   # NaN if sabs == 0, same as reference
        hoyer_ref[0] = hoyer
        thr = jnp.float32(x_thr_scale) * hoyer       # threshold in the scaled domain
        thr_sm[0] = thr
        # Raw-domain threshold for the single-compare spike path; guard the cases
        # where comparing raw x is not equivalent to comparing clamp(x/|t|,0,1).
        thr_raw = thr * abs_thr
        thr_raw = jnp.where(thr > 1.0, jnp.float32(jnp.inf), thr_raw)    # out<=1 -> never spikes
        thr_raw = jnp.where(thr <= 0.0, -jnp.float32(jnp.inf), thr_raw)  # out>=0 -> always spikes
        thr_sm[1] = thr_raw

    if multi_block:
        @pl.when((p == 0) & (i == 0))
        def _init():
            acc_sq[...] = jnp.zeros_like(acc_sq)
            acc_abs[...] = jnp.zeros_like(acc_abs)

    @pl.when(p == 0)
    def _reduce():
        x_raw = x_ref[...]
        if use_cache:
            cache[i] = x_raw                          # stash block for the spike pass
        xf = x_raw.astype(jnp.float32)
        # c = x_raw where 0 < x_raw/|t| < 1 else 0  (un-scaled accumulation)
        m = (xf > 0.0) & (xf < abs_thr)
        if tail_mask_needed:
            grow = i * blk_rows + lax.broadcasted_iota(jnp.int32, xf.shape, 0)
            m = m & (grow < rows)                     # mask garbage rows of the partial tail block
        c = jnp.where(m, xf, 0.0)
        if multi_block:
            c3 = c.reshape(-1, ACC_SUBLANES, LANES)   # vreg-sized chunks, layout no-op
            acc_sq[...] += jnp.sum(c3 * c3, axis=0)   # pure VPU adds (no cross-lane)
            acc_abs[...] += jnp.sum(c3, axis=0)       # |c| == c since c >= 0
        else:
            # single block: one cross-lane reduce, finalize right here
            write_thresholds(jnp.sum(c * c), jnp.sum(c))

    if multi_block:
        @pl.when((p == 0) & (i == nblk - 1))
        def _finalize():
            write_thresholds(jnp.sum(acc_sq[...]), jnp.sum(acc_abs[...]))

    @pl.when(p == 1)
    def _spike():
        if use_cache:
            x_raw = cache[i]                          # no second HBM read
        else:
            x_raw = x_ref[...]
        xf = x_raw.astype(jnp.float32)
        if if_spike:
            # exactly binary: single compare + select on the raw input
            out = jnp.where(xf >= thr_sm[1], 1.0, 0.0)
        else:
            out = jnp.clip(xf * scale, 0.0, 1.0)
            out = jnp.where(out >= thr_sm[0], 1.0, out)
        o_ref[...] = out.astype(o_ref.dtype)


def _spike_only_kernel(params_ref, thr_ref, x_ref, o_ref, *, if_spike):
    """spike_type='fixed' path: threshold is a constant, no reduction pass needed."""
    x = x_ref[...].astype(jnp.float32) * params_ref[0]
    out = jnp.clip(x, 0.0, 1.0)
    thr = thr_ref[0]
    if if_spike:
        out = jnp.where(out >= thr, 1.0, 0.0)
    else:
        out = jnp.where(out >= thr, 1.0, out)
    o_ref[...] = out.astype(o_ref.dtype)


def hoyer_bi_act_forward(x_nchw, threshold, *, spike_type="sum", x_thr_scale=1.0,
                         if_spike=True, momentum=0.1, running_hoyer_thr=0.0):
    """Training-mode HoyerBiAct forward. Returns (out, hoyer_thr, new_running_hoyer_thr)."""
    assert spike_type in ("sum", "fixed")
    # TODO(synk): spike_type='cw' (per-channel hoyer_thr) needs a per-channel
    # reduction layout; not implemented here.

    orig_shape = x_nchw.shape
    orig_dtype = x_nchw.dtype
    total = x_nchw.size
    itemsize = jnp.dtype(orig_dtype).itemsize

    flat = x_nchw.reshape(-1)
    pad = (-total) % LANES
    if pad:
        # TODO(synk): rare %128 ragged-tail fallback copies the tensor; in-kernel
        # lane masking of a 1-D layout would avoid the extra HBM traffic.
        flat = jnp.concatenate([flat, jnp.zeros((pad,), orig_dtype)])
    x2d = flat.reshape(-1, LANES)
    rows = x2d.shape[0]

    # Block sizing: one full-array block when it is small, otherwise fixed large
    # blocks (1 MiB f32) with a masked partial tail -- never tiny blocks.
    if rows <= MAX_BLOCK_ROWS:
        blk_rows = rows                      # equals full array dim -> always tile-legal
        nblk = 1
    else:
        blk_rows = MAX_BLOCK_ROWS            # multiple of 8/16/32 -> tile-legal for any dtype
        nblk = -(-rows // blk_rows)

    abs_t = jnp.abs(jnp.asarray(threshold, jnp.float32))
    params = jnp.stack([1.0 / abs_t, abs_t]).astype(jnp.float32)   # [scale, |threshold|]

    if spike_type == "sum":
        blk_bytes = blk_rows * LANES * itemsize
        cache_bytes = nblk * blk_bytes
        budget = _vmem_budget_bytes()
        # cache + double-buffered input + double-buffered output + accumulators + slack
        need_cached = cache_bytes + 4 * blk_bytes + (2 << 20)
        use_cache = need_cached <= budget
        need = need_cached if use_cache else 4 * blk_bytes + (2 << 20)
        vmem_limit = int(min(budget, max(need, 32 << 20)))

        cache_shape = (nblk, blk_rows, LANES) if use_cache else (1, ACC_SUBLANES, LANES)
        if use_cache:
            x_map = lambda p, i: (i * (1 - p), 0)   # spike pass: no HBM re-read
        else:
            x_map = lambda p, i: (i, 0)

        out2d, hoyer = pl.pallas_call(
            functools.partial(_fused_hoyer_spike_kernel,
                              x_thr_scale=float(x_thr_scale),
                              if_spike=bool(if_spike),
                              use_cache=bool(use_cache),
                              nblk=int(nblk),
                              blk_rows=int(blk_rows),
                              rows=int(rows)),
            out_shape=(jax.ShapeDtypeStruct(x2d.shape, orig_dtype),
                       jax.ShapeDtypeStruct((1,), jnp.float32)),
            grid_spec=pltpu.PrefetchScalarGridSpec(
                num_scalar_prefetch=0,
                grid=(2, nblk),
                in_specs=[pl.BlockSpec(memory_space=pltpu.SMEM),
                          pl.BlockSpec((blk_rows, LANES), x_map)],
                # During the reduce pass (p=0) the output block index stays at 0,
                # so no garbage output block is ever written back to HBM.
                out_specs=(pl.BlockSpec((blk_rows, LANES), lambda p, i: (i * p, 0)),
                           pl.BlockSpec(memory_space=pltpu.SMEM)),
                scratch_shapes=[pltpu.VMEM((ACC_SUBLANES, LANES), jnp.float32),
                                pltpu.VMEM((ACC_SUBLANES, LANES), jnp.float32),
                                pltpu.SMEM((2,), jnp.float32),
                                pltpu.VMEM(cache_shape, orig_dtype)]),
            compiler_params=pltpu.CompilerParams(
                dimension_semantics=("arbitrary", "arbitrary"),
                vmem_limit_bytes=vmem_limit),
        )(params, x2d)
        hoyer_thr = hoyer[0]
    else:  # 'fixed'
        hoyer_thr = jnp.float32(1.0)
        thr = (jnp.float32(x_thr_scale) * hoyer_thr).reshape(1)
        out2d = pl.pallas_call(
            functools.partial(_spike_only_kernel, if_spike=bool(if_spike)),
            out_shape=jax.ShapeDtypeStruct(x2d.shape, orig_dtype),
            grid_spec=pltpu.PrefetchScalarGridSpec(
                num_scalar_prefetch=0,
                grid=(nblk,),
                in_specs=[pl.BlockSpec(memory_space=pltpu.SMEM),
                          pl.BlockSpec(memory_space=pltpu.SMEM),
                          pl.BlockSpec((blk_rows, LANES), lambda i: (i, 0))],
                out_specs=pl.BlockSpec((blk_rows, LANES), lambda i: (i, 0))),
            compiler_params=pltpu.CompilerParams(
                dimension_semantics=("parallel",)),
        )(params, thr, x2d)

    if pad:
        out = out2d.reshape(-1)[:total].reshape(orig_shape)
    else:
        out = out2d.reshape(orig_shape)

    new_running = momentum * hoyer_thr + (1.0 - momentum) * jnp.float32(running_hoyer_thr)
    return out, hoyer_thr, new_running


def _reference_forward(x, threshold, x_thr_scale=1.0, if_spike=True):
    x = x / jnp.abs(threshold)
    c = jnp.clip(x, 0.0, 1.0)
    c = jnp.where(c >= 1.0, 0.0, c)
    hoyer = jnp.sum(c * c) / jnp.sum(jnp.abs(c))
    out = jnp.clip(x, 0.0, 1.0)
    if if_spike:
        out = jnp.where(out < x_thr_scale * hoyer, 0.0, out)
    out = jnp.where(out >= x_thr_scale * hoyer, 1.0, out)
    return out, hoyer


if __name__ == "__main__":
    key = jax.random.PRNGKey(0)
    x = jax.random.normal(key, (2, 4, 16, 16), dtype=jnp.float32)  # NCHW, like PyTorch

    # Deterministic parameter init, same as module __init__:
    threshold = jnp.float32(1.0)          # nn.Parameter(torch.tensor(1.0))
    running_hoyer_thr = 0.0               # running buffer starts at zero

    out, hoyer_thr, new_running = hoyer_bi_act_forward(
        x, threshold, spike_type="sum", x_thr_scale=1.0, if_spike=True,
        momentum=0.1, running_hoyer_thr=running_hoyer_thr)
    jax.block_until_ready(out)

    ref_out, ref_hoyer = _reference_forward(x, threshold)
    assert float(jnp.abs(hoyer_thr - ref_hoyer)) < 1e-5
    # binary output: allow (at most) a vanishingly small number of boundary flips
    assert float(jnp.mean(jnp.abs(out - ref_out))) < 1e-2

    print("KERNEL_OK")
</pallas_src>

<mosaic_0001>
module attributes {stable_mosaic.version = 11 : i64} {
  func.func @_fused_hoyer_spike_kernel(%arg0: i32, %arg1: i32, %arg2: memref<2xf32, #tpu.memory_space<smem>>, %arg3: memref<16x128xf32, #tpu.memory_space<vmem>>, %arg4: memref<16x128xf32, #tpu.memory_space<vmem>>, %arg5: memref<1xf32, #tpu.memory_space<smem>>, %arg6: memref<8x128xf32, #tpu.memory_space<vmem>>, %arg7: memref<8x128xf32, #tpu.memory_space<vmem>>, %arg8: memref<2xf32, #tpu.memory_space<smem>>, %arg9: memref<1x16x128xf32, #tpu.memory_space<vmem>>) attributes {dimension_semantics = [#tpu.dimension_semantics<arbitrary>, #tpu.dimension_semantics<arbitrary>], iteration_bounds = array<i64: 2, 1>, scalar_prefetch = 0 : i64, scratch_operands = 4 : i64, tpu.core_type = #tpu.core_type<tc>, window_params = [{transform_indices = @transform_0, window_bounds = array<i64: 2>}, {transform_indices = @transform_1, window_bounds = array<i64: 16, 128>}, {transform_indices = @transform_2, window_bounds = array<i64: 16, 128>}, {transform_indices = @transform_3, window_bounds = array<i64: 1>}]} {
    %c0 = arith.constant 0 : index
    %0 = memref.load %arg2[%c0] : memref<2xf32, #tpu.memory_space<smem>>
    %c1 = arith.constant 1 : index
    %1 = memref.load %arg2[%c1] : memref<2xf32, #tpu.memory_space<smem>>
    %c0_i32 = arith.constant 0 : i32
    %2 = arith.cmpi eq, %arg0, %c0_i32 : i32
    %3 = arith.extui %2 : i1 to i32
    %c0_i32_0 = arith.constant 0 : i32
    %4 = arith.cmpi ne, %3, %c0_i32_0 : i32
    scf.if %4 {
      %c0_2 = arith.constant 0 : index
      %c0_3 = arith.constant 0 : index
      %8 = vector.load %arg3[%c0_2, %c0_3] : memref<16x128xf32, #tpu.memory_space<vmem>>, vector<16x128xf32>
      %9 = arith.index_cast %arg1 : i32 to index
      %c0_4 = arith.constant 0 : index
      %c0_5 = arith.constant 0 : index
      %10 = vector.load %arg9[%9, %c0_4, %c0_5] : memref<1x16x128xf32, #tpu.memory_space<vmem>>, vector<1x16x128xf32>
      %11 = vector.shape_cast %10 : vector<1x16x128xf32> to vector<16x128xf32>
      %12 = vector.shape_cast %8 : vector<16x128xf32> to vector<1x16x128xf32>
      tpu.vector_store %arg9[%9, %c0_4, %c0_5], %12 {strides = array<i32>} : memref<1x16x128xf32, #tpu.memory_space<vmem>>, vector<1x16x128xf32>,
      %cst = arith.constant 0.000000e+00 : f32
      %13 = vector.broadcast %cst : f32 to vector<16x128xf32>
      %14 = arith.cmpf ogt, %8, %13 : vector<16x128xf32>
      %15 = vector.broadcast %1 : f32 to vector<16x128xf32>
      %16 = arith.cmpf olt, %8, %15 : vector<16x128xf32>
      %17 = arith.andi %14, %16 : vector<16x128xi1>
      %cst_6 = arith.constant 0.000000e+00 : f32
      %18 = vector.broadcast %cst_6 : f32 to vector<16x128xf32>
      %19 = arith.select %17, %8, %18 : vector<16x128xi1>, vector<16x128xf32>
      %20 = arith.mulf %19, %19 : vector<16x128xf32>
      %21 = vector.shape_cast %20 : vector<16x128xf32> to vector<1x16x128xf32>
      %cst_7 = arith.constant dense<0.000000e+00> : vector<1xf32>
      %22 = vector.multi_reduction <add>, %21, %cst_7 [1, 2] : vector<1x16x128xf32> to vector<1xf32>
      %23 = vector.shape_cast %22 : vector<1xf32> to vector<1x1x1xf32>
      %24 = vector.extract %23[0, 0, 0] : f32 from vector<1x1x1xf32>
      %25 = vector.shape_cast %19 : vector<16x128xf32> to vector<1x16x128xf32>
      %cst_8 = arith.constant dense<0.000000e+00> : vector<1xf32>
      %26 = vector.multi_reduction <add>, %25, %cst_8 [1, 2] : vector<1x16x128xf32> to vector<1xf32>
      %27 = vector.shape_cast %26 : vector<1xf32> to vector<1x1x1xf32>
      %28 = vector.extract %27[0, 0, 0] : f32 from vector<1x1x1xf32>
      %29 = arith.mulf %0, %24 : f32
      %30 = arith.divf %29, %28 : f32
      %c0_9 = arith.constant 0 : index
      %31 = memref.load %arg5[%c0_9] : memref<1xf32, #tpu.memory_space<smem>>
      memref.store %30, %arg5[%c0_9] : memref<1xf32, #tpu.memory_space<smem>>
      %cst_10 = arith.constant 1.000000e+00 : f32
      %32 = arith.mulf %cst_10, %30 : f32
      %c0_11 = arith.constant 0 : index
      %33 = memref.load %arg8[%c0_11] : memref<2xf32, #tpu.memory_space<smem>>
      memref.store %32, %arg8[%c0_11] : memref<2xf32, #tpu.memory_space<smem>>
      %34 = arith.mulf %32, %1 : f32
      %cst_12 = arith.constant 1.000000e+00 : f32
      %35 = arith.cmpf ogt, %32, %cst_12 : f32
      %cst_13 = arith.constant 0x7F800000 : f32
      %36 = arith.select %35, %cst_13, %34 : f32
      %cst_14 = arith.constant 0.000000e+00 : f32
      %37 = arith.cmpf ole, %32, %cst_14 : f32
      %cst_15 = arith.constant 0.000000e+00 : f32
      %cst_16 = arith.constant 0x7F800000 : f32
      %38 = arith.subf %cst_15, %cst_16 : f32
      %39 = arith.select %37, %38, %36 : f32
      %c1_17 = arith.constant 1 : index
      %40 = memref.load %arg8[%c1_17] : memref<2xf32, #tpu.memory_space<smem>>
      memref.store %39, %arg8[%c1_17] : memref<2xf32, #tpu.memory_space<smem>>
    } else {
    }
    %c1_i32 = arith.constant 1 : i32
    %5 = arith.cmpi eq, %arg0, %c1_i32 : i32
    %6 = arith.extui %5 : i1 to i32
    %c0_i32_1 = arith.constant 0 : i32
    %7 = arith.cmpi ne, %6, %c0_i32_1 : i32
    scf.if %7 {
      %8 = arith.index_cast %arg1 : i32 to index
      %c0_2 = arith.constant 0 : index
      %c0_3 = arith.constant 0 : index
      %9 = vector.load %arg9[%8, %c0_2, %c0_3] : memref<1x16x128xf32, #tpu.memory_space<vmem>>, vector<1x16x128xf32>
      %10 = vector.shape_cast %9 : vector<1x16x128xf32> to vector<16x128xf32>
      %c1_4 = arith.constant 1 : index
      %11 = memref.load %arg8[%c1_4] : memref<2xf32, #tpu.memory_space<smem>>
      %12 = vector.broadcast %11 : f32 to vector<16x128xf32>
      %13 = arith.cmpf oge, %10, %12 : vector<16x128xf32>
      %cst = arith.constant 1.000000e+00 : f32
      %cst_5 = arith.constant 0.000000e+00 : f32
      %14 = vector.broadcast %cst : f32 to vector<16x128xf32>
      %15 = vector.broadcast %cst_5 : f32 to vector<16x128xf32>
      %16 = arith.select %13, %14, %15 : vector<16x128xi1>, vector<16x128xf32>
      %c0_6 = arith.constant 0 : index
      %c0_7 = arith.constant 0 : index
      %17 = vector.load %arg4[%c0_6, %c0_7] : memref<16x128xf32, #tpu.memory_space<vmem>>, vector<16x128xf32>
      tpu.vector_store %arg4[%c0_6, %c0_7], %16 {strides = array<i32>} : memref<16x128xf32, #tpu.memory_space<vmem>>, vector<16x128xf32>,
    } else {
    }
    return
  }
  func.func @transform_0(%arg0: i32, %arg1: i32) -> i32 {
    %c0_i32 = arith.constant 0 : i32
    %c0_i32_0 = arith.constant 0 : i32
    return %c0_i32 : i32
  }
  func.func @transform_1(%arg0: i32, %arg1: i32) -> (i32, i32) {
    %c1_i32 = arith.constant 1 : i32
    %0 = arith.subi %c1_i32, %arg0 : i32
    %1 = arith.muli %arg1, %0 : i32
    %c0_i32 = arith.constant 0 : i32
    %c0_i32_0 = arith.constant 0 : i32
    return %1, %c0_i32 : i32, i32
  }
  func.func @transform_2(%arg0: i32, %arg1: i32) -> (i32, i32) {
    %0 = arith.muli %arg1, %arg0 : i32
    %c0_i32 = arith.constant 0 : i32
    %c0_i32_0 = arith.constant 0 : i32
    return %0, %c0_i32 : i32, i32
  }
  func.func @transform_3(%arg0: i32, %arg1: i32) -> i32 {
    %c0_i32 = arith.constant 0 : i32
    %c0_i32_0 = arith.constant 0 : i32
    return %c0_i32 : i32
  }
}

</mosaic_0001>

<bundles_post_ra>
// kernel: tpu_custom_call.1
= control target key start
LH: loop header
LB: loop body
LE: loop exit
PB: predicated region body
PF: predicated region fallthrough
CT: control target
= control target key end

     0   :  { %9 = vsyncpa [#allocation9], 0  ;;  %s780_s0 = inlined_call_operand.hbm [shape: f32[2], index: 0, kind: input, shape index: {}]   ;;  %s781_s1 = inlined_call_operand.hbm [shape: f32[16,128], index: 1, kind: input, shape index: {}]   ;;  %s782_s2 = inlined_call_operand.hbm [shape: f32[16,128], index: 2, kind: output, shape index: {0}]   ;;  %s783_s3 = inlined_call_operand.hbm [shape: f32[1], index: 3, kind: output, shape index: {1}]  }
   0x1   :  { %10 = vsyncpa [#allocation7], 0 }
   0x2   :  { %12 = vsyncpa [#allocation7 + $0x1], 0 }
   0x3   :  { %13 = vsyncpa [#allocation8], 0 }
   0x4   :  { %15 = vsyncpa [#allocation8 + $0x1], 0 }
   0x5   :  { %16 = vsyncpa [#allocation10], 0  ;;  %s673_s12 = smov 0   ;;  %s675_s13 = smov 0  }
   0x6   :  { %s677_s14 = smov 0  }
   0x7 LB: > { %s435_s15 = sadd.s32 4294967295, %s642_s14   ;;  %s436_s16 = sadd.s32 4294967294, %s642_s14   ;;  %s642_s14 = sphi %s677_s14, %s22_s14   ;;  %s638_s13 = sphi %s675_s13, %s789_s13   ;;  %s634_s12 = sphi %s673_s12, %s788_s12  }
   0x8   : > { %s34_s17 = sadd.s32 1, %s638_s13  ;;  %p437_p0 = scmp.ge.s32.totalorder %s642_s14, 1 }
   0x9   : > { %p36_p1 = scmp.ge.s32.totalorder %s34_s17, 2  ;;  %p139_p2 = scmp.lt.s32.totalorder %s642_s14, 3 }
   0xa   : > { %p695_p3 = scmp.eq.s32.totalorder %s435_s15, 0  ;;  %p439_p5 = scmp.ge.s32.totalorder %s642_s14, 2 }
   0xb   : > { %s791_s17 = smov (%p36_p1, %s34_s17), 0  ;;  %p701_p4 = pnand %p437_p0, %p139_p2 }
   0xc   : > { %p489_p7 = scmp.lt.s32.totalorder %s642_s14, 2  ;;  %p490_p8 = scmp.eq.s32.totalorder %s642_s14, 0 }
   0xd   : > { %p476_p6 = pneg %p701_p4  ;;  %s644_s20 = smov [#allocation11]  }
   0xe   : > { %s174_s21 = sshll.u32 %s644_s20, 4  ;;  %p712_p10 = pnand %p490_p8, %p489_p7  ;;  %s175_s21 = int_to_ptr.vmem [resolvable:$true] %s174_s21 }
   0xf   : > { %p477_p9 = pnand %p695_p3, %p476_p6  ;;  %s645_s23 = smov [#allocation6]  }
  0x10   : > { %p546_p11 = pneg %p712_p10  ;;  %s555_s26 = scalar_lea.vmem %s175_s21, 256 }
  0x11   : > { %479 = dma.hbm_to_smem (!%p477_p9), %s780_s0, 16, %s645_s23, [#allocation9]  }
  0x12   : > { %p556_p12 = scmp.ne.s32.totalorder %s175_s21, %s555_s26  ;;  %s562_s27 = scalar_lea.vmem %s175_s21, 512 }
  0x13   : > { %p563_p1 = scmp.lt.s32.totalorder %s175_s21, %s175_s21  ;;  %p564_p2 = scmp.lt.s32.totalorder %s562_s27, %s555_s26 }
  0x14   : > { %p558_p13 = pnand %p556_p12, %p546_p11 }
  0x15   : > { %p565_p6 = por %p564_p2, %p563_p1 }
  0x16   : > { %p559_p0 = pneg %p558_p13 }
  0x18   : > { %p566_p7 = pnand %p565_p6, %p559_p0 }
  0x1a   : > { %569 = shalt.err (!%p566_p7)
}
  0x1b   : > { %s646_s28 = smov 128   ;;  %s647_s29 = smov 8  }
  0x1c   : > { %483 = dma.hbm_to_vmem [thread:$0]  (!%p712_p10), %s781_s1, 256, %s175_s21, [#allocation7], %s646_s28, %s646_s28, %s647_s29  }
  0x1d   : > { %186 = sbr.rel (%p701_p4) target bundleno = 362 (0x16a), region = 28 }
  0x22   : > { %617 = dma.done.wait (%p695_p3), [#allocation9], 16  }
  0x23   : > { %619 = vsyncadd (%p695_p3), [#allocation9], 4294967280 }
  0x24   : > { %621 = dma.done.wait (%p695_p3), [#allocation7], 256  }
  0x25   : > { %623 = vsyncadd (%p695_p3), [#allocation7], 4294967040 }
  0x26   : > { %201 = sfence }
  0x27   : > { %s736_s5 = sld [smem:[#allocation6]]  ;;  %p445_p8 = scmp.ne.s32.totalorder %s634_s12, 0 }
  0x28   : > { %s738_s6 = sld [smem:[#allocation6 + $0x1]] }
  0x29   : > { %230 = sbr.rel (%p445_p8) target bundleno = 332 (0x14c), region = 40 }
  0x2e   : > { %v231_v0 = vld [vmem:[#allocation11] sm:$0xff]  ;;  %v232_v1 = vld [vmem:[#allocation11 + $0x8] sm:$0xff]  ;;  %v239_v2 = vstv %s738_s6 }
  0x2f   : > { %236 = vst [vmem:[#allocation5 + $0x8] sm:$0xff] %v232_v1  ;;  %vm237_vm0 = vcmp.gt.f32.partialorder %v231_v0, 0.0  ;;  %vm238_vm1 = vcmp.gt.f32.partialorder %v232_v1, 0.0  ;;  %vm240_vm2 = vcmp.lt.f32.partialorder %v231_v0, %v239_v2  ;;  %vm241_vm3 = vcmp.lt.f32.partialorder %v232_v1, %v239_v2  ;;  %235 = vst [vmem:[#allocation5] sm:$0xff] %v231_v0 }
  0x30   : > { %vm242_vm4 = vmand %vm237_vm0, %vm240_vm2 }
  0x31   : > { %vm243_vm5 = vmand %vm238_vm1, %vm241_vm3  ;;  %v244_v3 = vsel %vm242_vm4, %v231_v0, 0.0 }
  0x32   : > { %v245_v4 = vsel %vm243_vm5, %v232_v1, 0.0  ;;  %v246_v5 = vmul.f32 %v244_v3, %v244_v3 }
  0x33   : > { %v247_v6 = vmul.f32 %v245_v4, %v245_v4  ;;  %v258_v8 = vadd.f32 %v245_v4, %v244_v3 }
  0x35   : > { %v248_v7 = vadd.f32 %v247_v6, %v246_v5 }
  0x37   : > { %249 = vadd.xlane.f32.xlu0 %v248_v7 }
  0x3b   : > { %259 = vadd.xlane.f32.xlu0 %v258_v8 }
  0xc0   : > { %v250_v9 = vpop.xlane.xlu0 %249 }
  0xc1   : > { %v251_v10 = vrot.slane %v250_v9, 4 }
  0xc3   : > { %v252_v11 = vadd.f32 %v251_v10, %v250_v9 }
  0xc4   : > { %v260_v12 = vpop.xlane.xlu0 %259 }
  0xc5   : > { %v253_v13 = vrot.slane %v252_v11, 2  ;;  %v261_v14 = vrot.slane %v260_v12, 4 }
  0xc7   : > { %v262_v15 = vadd.f32 %v261_v14, %v260_v12  ;;  %v254_v16 = vadd.f32 %v253_v13, %v252_v11 }
  0xc9   : > { %v263_v17 = vrot.slane %v262_v15, 2  ;;  %v255_v18 = vrot.slane %v254_v16, 1 }
  0xcb   : > { %v264_v19 = vadd.f32 %v263_v17, %v262_v15  ;;  %v256_v20 = vadd.f32 %v255_v18, %v254_v16 }
  0xcd   : > { %454 = vpush %v256_v20  ;;  %v265_v21 = vrot.slane %v264_v19, 1 }
  0xcf   : > { %v266_v22 = vadd.f32 %v265_v21, %v264_v19 }
  0xd1   : > { %456 = vpush %v266_v22 }
  0xfe   : > { %s455_s7 = spop %454 }
  0xff   : > { %s268_s9 = smul.f32 %s455_s7, %s736_s5 }
 0x102   : > { %s457_s8 = spop %456 }
 0x103   : > { %v269_v23 = vstv %s457_s8 }
 0x104   : > { %531 = vrcp.f32 %v269_v23 }
 0x111   : > { %v532_v24 = vpop.eup %531 }
 0x112   : > { %458 = vpush %v532_v24 }
 0x143   : > { %s459_s10 = spop %458 }
 0x144   : > { %s272_s11 = smul.f32 %s459_s10, %s268_s9 }
 0x146   : > { %274 = sst [smem:[#allocation13]] %s272_s11  ;;  %s277_s18 = smul.f32 %s738_s6, %s272_s11 }
 0x147   : > { %276 = sst [smem:[#allocation4]] %s272_s11  ;;  %p278_p3 = scmp.gt.f32.partialorder %s272_s11, 1.0 }
 0x148   : > { %p280_p4 = scmp.le.f32.partialorder %s272_s11, 0.0 }
 0x149   : > { %s793_s18 = smov (%p278_p3, %s277_s18), inf }
 0x14a   : > { %s795_s18 = smov (%p280_p4, %s793_s18), -inf }
 0x14b   : > { %283 = sst [smem:[#allocation4 + $0x1]] %s795_s18 }
 0x14c PF: > { %p446_p9 = scmp.ne.s32.totalorder %s634_s12, 1 }
 0x14d   : > { %s447_s19 = sld [smem:[#allocation4 + $0x1]] (!%p446_p9) }
 0x14e   : > { %287 = sbr.rel (%p446_p9) target bundleno = 343 (0x157), region = 44 }
 0x153   : > { %v290_v25 = vld [vmem:[#allocation5] sm:$0xff]  ;;  %v291_v26 = vld [vmem:[#allocation5 + $0x8] sm:$0xff]  ;;  %v293_v27 = vstv %s447_s19  ;;  %v648_v28 = vmov 0.0  }
 0x154   : > { %vm294_vm6 = vcmp.ge.f32.partialorder %v290_v25, %v293_v27  ;;  %vm295_vm7 = vcmp.ge.f32.partialorder %v291_v26, %v293_v27 }
 0x155   : > { %v296_v29 = vsel %vm294_vm6, 1.0, %v648_v28  ;;  %v297_v30 = vsel %vm295_vm7, 1.0, %v648_v28 }
 0x156   : > { %298 = vst [vmem:[#allocation12] sm:$0xff] %v296_v29  ;;  %299 = vst [vmem:[#allocation12 + $0x8] sm:$0xff] %v297_v30 }
 0x157 PF: > { %p747_p10 = scmp.eq.s32.totalorder %s435_s15, 1  ;;  %s649_s12 = smov [#allocation12]  }
 0x158   : > { %s315_s21 = sshll.u32 %s649_s12, 4  ;;  %s316_s21 = int_to_ptr.vmem [resolvable:$true] %s315_s21 }
 0x159   : > { %s570_s22 = scalar_lea.vmem %s316_s21, 256  ;;  %s576_s23 = scalar_lea.vmem %s316_s21, 512 }
 0x15a   : > { %p571_p11 = scmp.ne.s32.totalorder %s316_s21, %s570_s22  ;;  %p577_p0 = scmp.lt.s32.totalorder %s316_s21, %s316_s21 }
 0x15b   : > { %p578_p1 = scmp.lt.s32.totalorder %s576_s23, %s570_s22 }
 0x15c   : > { %p572_p12 = pnand %p571_p11, %p747_p10 }
 0x15d   : > { %p579_p2 = por %p578_p1, %p577_p0 }
 0x15e   : > { %p573_p13 = pneg %p572_p12 }
 0x160   : > { %p580_p6 = pnand %p579_p2, %p573_p13 }
 0x162   : > { %583 = shalt.err (!%p580_p6)
}
 0x163   : > { %s650_s24 = smov 128   ;;  %s651_s15 = smov 8  }
 0x164   : > { %469 = dma.vmem_to_hbm [thread:$0]  (%p747_p10), %s316_s21, 256, %s782_s2, [#allocation8], %s650_s24, %s650_s24, %s651_s15  }
 0x165   : > { %s652_s27 = smov [#allocation13]  }
 0x166   : > { %471 = dma.smem_to_hbm (%p747_p10), %s652_s27, 16, %s783_s3, [#allocation10]  }
 0x167   : > { %625 = dma.done.wait (%p747_p10), [#allocation10], 16  }
 0x168   : > { %627 = vsyncadd (%p747_p10), [#allocation10], 4294967280 }
 0x169   : > { %335 = sfence }
 0x16a PF: > { %p497_p7 = scmp.eq.s32.totalorder %s436_s16, 1 }
 0x16c   : > { %p485_p8 = pnand %p497_p7, %p439_p5 }
 0x16e   : > { %p486_p3 = pneg %p485_p8 }
 0x170   : > { %629 = dma.done.wait (%p486_p3), [#allocation8], 256  }
 0x171   : > { %631 = vsyncadd (%p486_p3), [#allocation8], 4294967040  ;;  %s22_s14 = sadd.s32 1, %s642_s14   ;;  %s788_s12 = smov %s638_s13 }
 0x172   : > { %p19_p4 = scmp.ge.s32.totalorder %s22_s14, 4   ;;  %s789_s13 = smov %s791_s17 }
 0x174   :  { %21 = sbr.rel (!%p19_p4) target bundleno = 7 (0x7), region = 100 }
 0x179   :  { %350 = vsyncpa [#allocation7], 1 }
 0x17a   :  { %352 = vsyncpa [#allocation7 + $0x1], 1 }
 0x17b   :  { %353 = vsyncpa [#allocation8], 1 }
 0x17c   :  { %355 = vsyncpa [#allocation8 + $0x1], 1 }
 0x17d   :  { %356 = vsyncpa [#allocation9], 1 }
 0x17e   :  { %358 = vsyncpa [#allocation9 + $0x1], 1 }
 0x17f   :  { %359 = vsyncpa [#allocation10], 1 }
 0x180   :  { %361 = vsyncpa [#allocation10 + $0x1], 1 }

</bundles_post_ra>
